<compile_context>
chip_gen: v5e
topology: v5e:2x2
jax: 0.10.0
libtpu: 0.0.40
codegen_flags: <defaults>
</compile_context>

<pallas_src>
import jax
import jax.numpy as jnp
from jax.experimental import pallas as pl
from jax.experimental.pallas import tpu as pltpu


_LANE = 128
_TARGET_BLOCK_BYTES = 4 * 1024 * 1024   # ~4 MiB streaming tiles (good v6e, better v7x)
_MAX_BLOCK_BYTES = 8 * 1024 * 1024      # hard per-block cap
_VMEM_LIMIT_BYTES = 40 * 1024 * 1024    # >= 4 x max block (in+out, double-buffered) + params


def _plan_tiles(nc, hw, itemsize):
    """Pick (row_block, lane_block) for a lane-dense (nc, hw) elementwise pass."""
    sub = max(8, 32 // itemsize)         # sublane packing multiple: 8 f32 / 16 bf16 / 32 i8
    min_rows = nc if nc <= sub else sub

    # Lane (last-dim) blocking only if a minimal-row, full-width block overflows the cap.
    if hw > _LANE and min_rows * hw * itemsize > _MAX_BLOCK_BYTES:
        lanes = max(1, _MAX_BLOCK_BYTES // (min_rows * itemsize * _LANE))
        hw_blk = min(lanes, pl.cdiv(hw, _LANE)) * _LANE
    else:
        hw_blk = hw

    # Row (second-to-last dim) blocking, targeting ~_TARGET_BLOCK_BYTES per block.
    row_bytes = hw_blk * itemsize
    if nc <= sub:
        rows = nc                        # block equals full leading dim -> always legal
    else:
        rows = min(nc, max(sub, _TARGET_BLOCK_BYTES // max(1, row_bytes)))
        rows = max(sub, (rows // sub) * sub)
        while rows > sub and rows * row_bytes > _MAX_BLOCK_BYTES:
            rows -= sub

    # Megacore (v7x): a large single-block grid leaves one TC idle; split the lane axis.
    if (pl.cdiv(nc, rows) * pl.cdiv(hw, hw_blk) < 2
            and hw_blk > _LANE
            and rows * row_bytes >= _TARGET_BLOCK_BYTES):
        hw_blk = pl.cdiv(pl.cdiv(hw, 2), _LANE) * _LANE

    return rows, hw_blk


def normalization(img, mean, std):
    """img: (N, C, H, W); mean, std: (C,).

    Returns (img - mean[None,:,None,None]) / std[None,:,None,None].
    """
    N, C, H, W = img.shape
    nc, hw = N * C, H * W
    dtype = img.dtype
    itemsize = jnp.dtype(dtype).itemsize

    # Lane-dense layout: one row per (n, c) plane.
    x = img.reshape(nc, hw)

    R, L = _plan_tiles(nc, hw, itemsize)
    n_i = pl.cdiv(nc, R)
    n_j = pl.cdiv(hw, L)
    nc_pad = n_i * R                      # pad params so in-kernel row slices never go OOB

    # Fold (x - mean) / std into one FMA: x * a + b with a = 1/std, b = -mean/std.
    # Row n*C + c corresponds to channel c.
    mean32 = mean.astype(jnp.float32)
    std32 = std.astype(jnp.float32)
    a = jnp.tile(1.0 / std32, N)
    b = jnp.tile(-mean32 / std32, N)
    a = jnp.pad(a, (0, nc_pad - nc), constant_values=1.0).astype(dtype).reshape(nc_pad, 1)
    b = jnp.pad(b, (0, nc_pad - nc), constant_values=0.0).astype(dtype).reshape(nc_pad, 1)

    def kernel(scale_ref, bias_ref, img_ref, out_ref):
        # scale_ref/bias_ref: (nc_pad, 1) resident in VMEM; img_ref/out_ref: (R, L) tiles.
        i = pl.program_id(0)
        r0 = pl.multiple_of(i * R, R)      # always sublane-aligned (R mult-of-8 when n_i > 1)
        s = scale_ref[pl.ds(r0, R), :]     # (R, 1), broadcast over lanes
        t = bias_ref[pl.ds(r0, R), :]
        out_ref[...] = img_ref[...] * s + t

    out = pl.pallas_call(
        kernel,
        out_shape=jax.ShapeDtypeStruct((nc, hw), dtype),
        grid=(n_i, n_j),
        in_specs=[
            pl.BlockSpec((nc_pad, 1), lambda i, j: (0, 0)),  # scale: pipeline-resident
            pl.BlockSpec((nc_pad, 1), lambda i, j: (0, 0)),  # bias:  pipeline-resident
            pl.BlockSpec((R, L), lambda i, j: (i, j)),       # image tile
        ],
        out_specs=pl.BlockSpec((R, L), lambda i, j: (i, j)),
        compiler_params=pltpu.CompilerParams(
            dimension_semantics=("parallel", "parallel"),
            vmem_limit_bytes=_VMEM_LIMIT_BYTES,
        ),
    )(a, b, x)

    return out.reshape(N, C, H, W)


if __name__ == "__main__":
    key = jax.random.PRNGKey(0)
    k_img, k_mean, k_std = jax.random.split(key, 3)

    N, C, H, W = 2, 4, 16, 16
    img = jax.random.normal(k_img, (N, C, H, W), dtype=jnp.float32)
    # Deterministic per-channel parameters (module __init__ takes (C,) tensors
    # viewed as (C, 1, 1)).
    mean = jax.random.normal(k_mean, (C,), dtype=jnp.float32) * 0.1 + 0.45
    std = jax.random.uniform(k_std, (C,), dtype=jnp.float32, minval=0.2, maxval=0.3)

    out = jax.block_until_ready(normalization(img, mean, std))

    # Pure-JAX reference (matches PyTorch broadcasting of (C,1,1) over NCHW).
    ref = (img - mean[None, :, None, None]) / std[None, :, None, None]

    assert out.shape == img.shape and out.dtype == img.dtype
    assert jnp.allclose(out, ref, rtol=1e-5, atol=1e-5), "mismatch vs reference"

    print("KERNEL_OK")
</pallas_src>

<mosaic_0001>
module attributes {stable_mosaic.version = 11 : i64} {
  func.func @kernel(%arg0: i32, %arg1: i32, %arg2: memref<8x1xf32, #tpu.memory_space<vmem>>, %arg3: memref<8x1xf32, #tpu.memory_space<vmem>>, %arg4: memref<8x256xf32, #tpu.memory_space<vmem>>, %arg5: memref<8x256xf32, #tpu.memory_space<vmem>>) attributes {dimension_semantics = [#tpu.dimension_semantics<parallel>, #tpu.dimension_semantics<parallel>], iteration_bounds = array<i64: 1, 1>, scalar_prefetch = 0 : i64, scratch_operands = 0 : i64, tpu.core_type = #tpu.core_type<tc>, window_params = [{pipeline_mode = #tpu.pipeline_mode<synchronous>, transform_indices = @transform_0, window_bounds = array<i64: 8, 1>}, {pipeline_mode = #tpu.pipeline_mode<synchronous>, transform_indices = @transform_1, window_bounds = array<i64: 8, 1>}, {transform_indices = @transform_2, window_bounds = array<i64: 8, 256>}, {transform_indices = @transform_3, window_bounds = array<i64: 8, 256>}]} {
    %c8_i32 = arith.constant 8 : i32
    %0 = arith.muli %arg0, %c8_i32 : i32
    %1 = tpu.assume_multiple %0, 8 : i32
    %2 = arith.index_cast %1 : i32 to index
    %c0 = arith.constant 0 : index
    %3 = vector.load %arg2[%2, %c0] : memref<8x1xf32, #tpu.memory_space<vmem>>, vector<8x1xf32>
    %4 = arith.index_cast %1 : i32 to index
    %c0_0 = arith.constant 0 : index
    %5 = vector.load %arg3[%4, %c0_0] : memref<8x1xf32, #tpu.memory_space<vmem>>, vector<8x1xf32>
    %c0_1 = arith.constant 0 : index
    %c0_2 = arith.constant 0 : index
    %6 = vector.load %arg4[%c0_1, %c0_2] : memref<8x256xf32, #tpu.memory_space<vmem>>, vector<8x256xf32>
    %7 = vector.broadcast %3 : vector<8x1xf32> to vector<8x256xf32>
    %8 = arith.mulf %6, %7 : vector<8x256xf32>
    %9 = vector.broadcast %5 : vector<8x1xf32> to vector<8x256xf32>
    %10 = arith.addf %8, %9 : vector<8x256xf32>
    %c0_3 = arith.constant 0 : index
    %c0_4 = arith.constant 0 : index
    %11 = vector.load %arg5[%c0_3, %c0_4] : memref<8x256xf32, #tpu.memory_space<vmem>>, vector<8x256xf32>
    tpu.vector_store %arg5[%c0_3, %c0_4], %10 {strides = array<i32>} : memref<8x256xf32, #tpu.memory_space<vmem>>, vector<8x256xf32>,
    return
  }
  func.func @transform_0(%arg0: i32, %arg1: i32) -> (i32, i32) {
    %c0_i32 = arith.constant 0 : i32
    %c0_i32_0 = arith.constant 0 : i32
    %c0_i32_1 = arith.constant 0 : i32
    return %c0_i32, %c0_i32_0 : i32, i32
  }
  func.func @transform_1(%arg0: i32, %arg1: i32) -> (i32, i32) {
    %c0_i32 = arith.constant 0 : i32
    %c0_i32_0 = arith.constant 0 : i32
    %c0_i32_1 = arith.constant 0 : i32
    return %c0_i32, %c0_i32_0 : i32, i32
  }
  func.func @transform_2(%arg0: i32, %arg1: i32) -> (i32, i32) {
    %c0_i32 = arith.constant 0 : i32
    return %arg0, %arg1 : i32, i32
  }
  func.func @transform_3(%arg0: i32, %arg1: i32) -> (i32, i32) {
    %c0_i32 = arith.constant 0 : i32
    return %arg0, %arg1 : i32, i32
  }
}

</mosaic_0001>

<bundles_post_ra>
// kernel: tpu_custom_call.1
= control target key start
LH: loop header
LB: loop body
LE: loop exit
PB: predicated region body
PF: predicated region fallthrough
CT: control target
= control target key end

     0   :  { %v83_v1 = vmov 0   ;;  %s120_s0 = inlined_call_operand.vmem [shape: f32[8,1], index: 0, kind: input, shape index: {}]   ;;  %s121_s1 = inlined_call_operand.vmem [shape: f32[8,1], index: 1, kind: input, shape index: {}]   ;;  %s122_s2 = inlined_call_operand.vmem [shape: f32[8,256], index: 2, kind: input, shape index: {}]   ;;  %s123_s3 = inlined_call_operand.hbm [shape: f32[8,256], index: 3, kind: output, shape index: {}]  }
   0x1   :  { %v17_v0 = vld [vmem:[%s120_s0] sm:$0xff]  ;;  %56 = vset.pattern.permute.xlu0 %v83_v1 }
   0x2   :  { %8 = vsyncpa [#allocation3], 0  ;;  %24 = vperm.xlu0 %56, %v17_v0   ;;  %v19_v2 = vld [vmem:[%s121_s1] sm:$0xff]  ;;  %v21_v5 = vld [vmem:[%s122_s2 + $0x8] sm:$0xff]  ;;  %s84_s0 = smov [#allocation2]   ;;  %s45_s23 = sshll.u32 %s123_s3, 4  ;;  %s46_s23 = int_to_ptr.hbm [resolvable:$true] %s45_s23 }
   0x3   :  { %v20_v4 = vld [vmem:[%s122_s2] sm:$0xff]  ;;  %s43_s20 = sshll.u32 %s84_s0, 4  ;;  %s44_s20 = int_to_ptr.vmem [resolvable:$true] %s43_s20 }
   0xa   :  { %31 = vperm.xlu0 %56, %v19_v2  }
  0x74   :  { %v25_v3 = vpop.permute.xlu0 %24 }
  0x75   :  { %v27_v6 = vmul.f32 %v25_v3, %v20_v4  ;;  %v28_v7 = vmul.f32 %v25_v3, %v21_v5 }
  0x7c   :  { %v32_v8 = vpop.permute.xlu0 %31 }
  0x7d   :  { %v34_v9 = vadd.f32 %v32_v8, %v27_v6  ;;  %v35_v10 = vadd.f32 %v32_v8, %v28_v7 }
  0x7f   :  { %36 = vst [vmem:[#allocation2] sm:$0xff] %v34_v9 }
  0x80   :  { %37 = vst [vmem:[#allocation2 + $0x8] sm:$0xff] %v35_v10 }
  0x81   :  { %48 = dma.vmem_to_hbm [thread:$0]  %s44_s20, 256, %s46_s23, [#allocation3]  }
  0x82   :  { %81 = dma.done.wait [#allocation3], 256  }
  0x83   :  { %82 = vsyncadd [#allocation3], 4294967040 }
  0x84   :  { %53 = vsyncpa [#allocation3], 1 }

</bundles_post_ra>
